<compile_context>
chip_gen: v7x
topology: tpu7x:2x2x1
jax: 0.10.0
libtpu: 0.0.40
codegen_flags: <defaults>
</compile_context>

<pallas_src>
import functools

import jax
import jax.numpy as jnp
from jax.experimental import pallas as pl
from jax.experimental.pallas import tpu as pltpu


def psl_lora_kernel(prefs_ref, theta_ref, out_ref, *, n_obj):
    """One (batch, feature) tile: out = Theta[0] + sum_k prefs[:, k] * Theta[k+1]."""
    prefs = prefs_ref[...]            # (tb, n_obj)   f32
    theta = theta_ref[...]            # (n_obj+1, tn) f32

    # Bias row + first multiply-add; remaining n_obj-1 terms unroll statically.
    out = theta[0:1, :] + prefs[:, 0:1] * theta[1:2, :]
    for k in range(1, n_obj):
        out = out + prefs[:, k:k + 1] * theta[k + 1:k + 2, :]

    out_ref[...] = out


def _round_up(x, m):
    return ((x + m - 1) // m) * m


def psl_lora_forward(prefs, theta, *, max_batch_tile=512, max_feature_tile=2048):
    """prefs: (B, n_obj) f32, theta: (n_obj+1, n_var) f32 -> (B, n_var) f32."""
    prefs = jnp.asarray(prefs, dtype=jnp.float32)
    theta = jnp.asarray(theta, dtype=jnp.float32)

    B, n_obj = prefs.shape
    n_var = theta.shape[1]
    assert theta.shape[0] == n_obj + 1

    # --- batch tiling: tile is a multiple of 8, capped ---
    tb = min(max_batch_tile, _round_up(B, 8))
    B_p = _round_up(B, tb)
    prefs_p = prefs
    if B_p != B:
        prefs_p = jnp.pad(prefs, ((0, B_p - B), (0, 0)))

    # --- feature tiling: lane-dense tile (multiple of 128), capped ---
    tn = min(max_feature_tile, _round_up(n_var, 128))
    n_var_p = _round_up(n_var, tn)
    theta_p = theta
    if n_var_p != n_var:
        theta_p = jnp.pad(theta, ((0, 0), (0, n_var_p - n_var)))

    grid = (B_p // tb, n_var_p // tn)
    kernel = functools.partial(psl_lora_kernel, n_obj=n_obj)

    out_p = pl.pallas_call(
        kernel,
        out_shape=jax.ShapeDtypeStruct((B_p, n_var_p), jnp.float32),
        grid=grid,
        in_specs=[
            # prefs: one batch tile per grid row; re-used across feature tiles.
            pl.BlockSpec((tb, n_obj), lambda i, j: (i, 0)),
            # Theta: one feature tile per grid column; re-used across batch tiles.
            pl.BlockSpec((n_obj + 1, tn), lambda i, j: (0, j)),
        ],
        out_specs=pl.BlockSpec((tb, tn), lambda i, j: (i, j)),
        compiler_params=pltpu.CompilerParams(
            # All tiles are independent -> shard across TCs on v7x megacore.
            dimension_semantics=("parallel", "parallel"),
        ),
    )(prefs_p, theta_p)

    # Strip padding back to the public (B, n_var) signature.
    return out_p[:B, :n_var]


if __name__ == "__main__":
    # Small shapes consistent with the module: n_obj objectives, n_var decision vars.
    n_obj = 3
    n_var = 32
    batch = 8

    key = jax.random.PRNGKey(0)
    k_theta, k_prefs = jax.random.split(key)

    # Deterministic parameter init, mirroring torch.rand(n_obj + 1, n_var).
    theta = jax.random.uniform(k_theta, (n_obj + 1, n_var), dtype=jnp.float32)

    # Preference vectors (rows on the simplex, like get_random_prefs would give).
    raw = jax.random.uniform(k_prefs, (batch, n_obj), dtype=jnp.float32)
    prefs = raw / jnp.sum(raw, axis=1, keepdims=True)

    out = psl_lora_forward(prefs, theta)
    out = jax.block_until_ready(out)

    # Reference check (plain JAX == PyTorch forward semantics).
    gen_theta = jnp.concatenate(
        [jnp.ones((batch, 1), dtype=jnp.float32), prefs], axis=1
    )
    ref = gen_theta @ theta
    assert out.shape == (batch, n_var)
    assert jnp.allclose(out, ref, atol=1e-5, rtol=1e-5)

    # TODO(synk): optimize()/evaluate() (Adam loop, problem.evaluate) are host-side
    # training utilities, not part of the forward pass, and are not translated.

    print("KERNEL_OK")
</pallas_src>

<mosaic_0001>
module attributes {stable_mosaic.version = 11 : i64} {
  func.func @psl_lora_kernel(%arg0: i32, %arg1: i32, %arg2: memref<8x3xf32, #tpu.memory_space<vmem>>, %arg3: memref<4x128xf32, #tpu.memory_space<vmem>>, %arg4: memref<8x128xf32, #tpu.memory_space<vmem>>) attributes {dimension_semantics = [#tpu.dimension_semantics<parallel>, #tpu.dimension_semantics<parallel>], iteration_bounds = array<i64: 1, 1>, scalar_prefetch = 0 : i64, scratch_operands = 0 : i64, tpu.core_type = #tpu.core_type<tc>, window_params = [{transform_indices = @transform_0, window_bounds = array<i64: 8, 3>}, {transform_indices = @transform_1, window_bounds = array<i64: 4, 128>}, {transform_indices = @transform_2, window_bounds = array<i64: 8, 128>}]} {
    %c0 = arith.constant 0 : index
    %c0_0 = arith.constant 0 : index
    %0 = vector.load %arg2[%c0, %c0_0] : memref<8x3xf32, #tpu.memory_space<vmem>>, vector<8x3xf32>
    %c0_1 = arith.constant 0 : index
    %c0_2 = arith.constant 0 : index
    %1 = vector.load %arg3[%c0_1, %c0_2] : memref<4x128xf32, #tpu.memory_space<vmem>>, vector<4x128xf32>
    %2 = vector.extract_strided_slice %1 {offsets = [0, 0], sizes = [1, 128], strides = [1, 1]} : vector<4x128xf32> to vector<1x128xf32>
    %3 = vector.extract_strided_slice %0 {offsets = [0, 0], sizes = [8, 1], strides = [1, 1]} : vector<8x3xf32> to vector<8x1xf32>
    %4 = vector.extract_strided_slice %1 {offsets = [1, 0], sizes = [1, 128], strides = [1, 1]} : vector<4x128xf32> to vector<1x128xf32>
    %5 = vector.broadcast %3 : vector<8x1xf32> to vector<8x128xf32>
    %6 = vector.broadcast %4 : vector<1x128xf32> to vector<8x128xf32>
    %7 = arith.mulf %5, %6 : vector<8x128xf32>
    %8 = vector.broadcast %2 : vector<1x128xf32> to vector<8x128xf32>
    %9 = arith.addf %8, %7 : vector<8x128xf32>
    %10 = vector.extract_strided_slice %0 {offsets = [0, 1], sizes = [8, 1], strides = [1, 1]} : vector<8x3xf32> to vector<8x1xf32>
    %11 = vector.extract_strided_slice %1 {offsets = [2, 0], sizes = [1, 128], strides = [1, 1]} : vector<4x128xf32> to vector<1x128xf32>
    %12 = vector.broadcast %10 : vector<8x1xf32> to vector<8x128xf32>
    %13 = vector.broadcast %11 : vector<1x128xf32> to vector<8x128xf32>
    %14 = arith.mulf %12, %13 : vector<8x128xf32>
    %15 = arith.addf %9, %14 : vector<8x128xf32>
    %16 = vector.extract_strided_slice %0 {offsets = [0, 2], sizes = [8, 1], strides = [1, 1]} : vector<8x3xf32> to vector<8x1xf32>
    %17 = vector.extract_strided_slice %1 {offsets = [3, 0], sizes = [1, 128], strides = [1, 1]} : vector<4x128xf32> to vector<1x128xf32>
    %18 = vector.broadcast %16 : vector<8x1xf32> to vector<8x128xf32>
    %19 = vector.broadcast %17 : vector<1x128xf32> to vector<8x128xf32>
    %20 = arith.mulf %18, %19 : vector<8x128xf32>
    %21 = arith.addf %15, %20 : vector<8x128xf32>
    %c0_3 = arith.constant 0 : index
    %c0_4 = arith.constant 0 : index
    %22 = vector.load %arg4[%c0_3, %c0_4] : memref<8x128xf32, #tpu.memory_space<vmem>>, vector<8x128xf32>
    tpu.vector_store %arg4[%c0_3, %c0_4], %21 {strides = array<i32>} : memref<8x128xf32, #tpu.memory_space<vmem>>, vector<8x128xf32>,
    return
  }
  func.func @transform_0(%arg0: i32, %arg1: i32) -> (i32, i32) {
    %c0_i32 = arith.constant 0 : i32
    %c0_i32_0 = arith.constant 0 : i32
    return %arg0, %c0_i32 : i32, i32
  }
  func.func @transform_1(%arg0: i32, %arg1: i32) -> (i32, i32) {
    %c0_i32 = arith.constant 0 : i32
    %c0_i32_0 = arith.constant 0 : i32
    return %c0_i32, %arg1 : i32, i32
  }
  func.func @transform_2(%arg0: i32, %arg1: i32) -> (i32, i32) {
    %c0_i32 = arith.constant 0 : i32
    return %arg0, %arg1 : i32, i32
  }
}

</mosaic_0001>

<bundles_post_ra>
// kernel: tpu_custom_call.1
= control target key start
LH: loop header
LB: loop body
LE: loop exit
PB: predicated region body
PF: predicated region fallthrough
CT: control target
= control target key end

     0   :  { %v96_v1 = vmov 0   ;;  %v97_v2 = vmov 2   ;;  %s133_s0 = inlined_call_operand.vmem [shape: f32[8,3], index: 0, kind: input, shape index: {}]   ;;  %s134_s1 = inlined_call_operand.vmem [shape: f32[4,128], index: 1, kind: input, shape index: {}]   ;;  %s135_s2 = inlined_call_operand.hbm [shape: f32[8,128], index: 2, kind: output, shape index: {}]  }
   0x1   :  { %v12_v0 = vld [vmem:[%s133_s0] sm:$0xff]  ;;  %68 = vset.pattern.permute.xlu0 %v96_v1  ;;  %70 = vset.pattern.permute.xlu1 %v97_v2 }
   0x2   :  { %7 = vsyncpa [#allocation3], 0  ;;  %16 = vperm.xlu0 %68, %v12_v0   ;;  %40 = vperm.xlu1 %70, %v12_v0   ;;  %v98_v3 = vmov 1   ;;  %v19_v4 = vlaneseq  ;;  %v13_v7 = vld [vmem:[%s134_s1] sm:$0xf]  ;;  %s99_s0 = smov [#allocation2]  }
   0x3   :  { %s56_s13 = sshll.u32 %s99_s0, 4  ;;  %s57_s13 = int_to_ptr.vmem [resolvable:$true] %s56_s13 }
   0x4   :  { %v20_v5 = vshrl.u32 %v19_v4, 7  ;;  %s72_s1 = scalar_lea.vmem %s57_s13, 128  ;;  %p77_p1 = scmp.lt.s32.totalorder %s57_s13, %s57_s13 }
   0x5   :  { %p73_p0 = scmp.ne.s32.totalorder %s57_s13, %s72_s1  ;;  %p78_p2 = scmp.lt.s32.totalorder %s72_s1, %s72_s1 }
   0x6   :  { %69 = vset.pattern.permute.xlu0 %v98_v3  ;;  %v21_v6 = vsub.s32 1, %v20_v5  ;;  %v26_v9 = vsub.s32 0, %v20_v5  ;;  %v35_v10 = vsub.s32 2, %v20_v5  ;;  %v45_v11 = vsub.s32 3, %v20_v5 }
   0x7   :  { %30 = vperm.xlu0 %69, %v12_v0   ;;  %p79_p3 = por %p78_p2, %p77_p1 }
   0x8   :  { %v22_v8 = vrot.slane %v13_v7, %v21_v6  ;;  %v27_v13 = vrot.slane %v13_v7, %v26_v9  ;;  %v36_v15 = vrot.slane %v13_v7, %v35_v10  ;;  %v46_v16 = vrot.slane %v13_v7, %v45_v11 }
   0x9   :  { %p80_p4 = pnand %p79_p3, %p73_p0 }
   0xb   :  { %71 = vset.pattern.permute.xlu0 %v97_v2 }
  0x81   :  { %v17_v12 = vpop.permute.xlu0 %16  ;;  %v41_v17 = vpop.permute.xlu1 %40 }
  0x82   :  { %v23_v14 = vmul.f32 %v22_v8, %v17_v12  ;;  %v47_v21 = vmul.f32 %v46_v16, %v41_v17 }
  0x84   :  { %v28_v19 = vadd.f32 %v27_v13, %v23_v14 }
  0x86   :  { %v31_v18 = vpop.permute.xlu0 %30 }
  0x87   :  { %v37_v20 = vmul.f32 %v36_v15, %v31_v18 }
  0x89   :  { %v38_v22 = vadd.f32 %v37_v20, %v28_v19 }
  0x8b   :  { %v48_v23 = vadd.f32 %v47_v21, %v38_v22 }
  0x8d   :  { %49 = vst [vmem:[#allocation2] sm:$0xff] %v48_v23 }
  0x8e   :  { %83 = shalt.err (!%p80_p4)
}
  0x8f   :  { %s84_s16 = scalar_lea.hbm %s135_s2, 128 }
  0x90   :  { %p85_p5 = scmp.ne.s32.totalorder %s135_s2, %s84_s16  ;;  %p88_p6 = scmp.lt.u32.totalorder %s84_s16, %s135_s2 }
  0x92   :  { %p90_p7 = pnand %p88_p6, %p85_p5 }
  0x94   :  { %93 = shalt.err (!%p90_p7)
}
  0x95   :  { %59 = dma.vmem_to_hbm [thread:$0]  %s57_s13, 128, %s135_s2, [#allocation3]  }
  0x96   :  { %94 = dma.done.wait [#allocation3], 128  }
  0x97   :  { %95 = vsyncadd [#allocation3], 4294967168 }
  0x98   :  { %63 = vsyncpa [#allocation3], 1 }

</bundles_post_ra>
